<compile_context>
chip_gen: v7x
topology: tpu7x:2x2x1
jax: 0.10.0
libtpu: 0.0.40
codegen_flags: <defaults>
</compile_context>

<pallas_src>
import functools

import jax
import jax.numpy as jnp
from jax.experimental import pallas as pl
from jax.experimental.pallas import tpu as pltpu


def _round_up(a, b):
    return ((a + b - 1) // b) * b


def _lookahead_kernel(body_ref, halo_ref, w_ref, o_ref, win_ref, *,
                      tile_rows, halo_rows, n_batch, context, valid_rows):
    """Depthwise lookahead conv + hardtanh on a flattened (rows=T*N, H) view.

    body_ref: (tile_rows, H)  rows [i*tile_rows, (i+1)*tile_rows) of the input
    halo_ref: (halo_rows, H)  rows starting at (i+1)*tile_rows (lookahead halo)
    w_ref   : (context,  H)   per-feature filter taps (resident)
    o_ref   : (tile_rows, H)  output rows for this tile
    win_ref : (tile_rows + halo_rows, H) f32 scratch window

    out[r, h] = clamp( sum_k x[r + k*N, h] * w[k, h], 0, 20 )
    Rows with global index >= valid_rows are treated as zero; this implements
    the `is_last` right zero-pad and neutralises ragged-edge DMA garbage and
    the clamped halo block.  Only edge tiles whose used window can reach past
    valid_rows pay for the mask.
    """
    i = pl.program_id(0)
    row0 = i * tile_rows
    lookahead = (context - 1) * n_batch

    needs_mask = row0 + tile_rows + lookahead > valid_rows

    @pl.when(jnp.logical_not(needs_mask))
    def _fast():
        # Interior tile: every window row a valid output can touch is real data.
        win_ref[0:tile_rows, :] = body_ref[...].astype(jnp.float32)
        win_ref[tile_rows:tile_rows + halo_rows, :] = (
            halo_ref[...].astype(jnp.float32))

    @pl.when(needs_mask)
    def _masked():
        body_g = row0 + jax.lax.broadcasted_iota(jnp.int32, (tile_rows, 1), 0)
        halo_g = (row0 + tile_rows
                  + jax.lax.broadcasted_iota(jnp.int32, (halo_rows, 1), 0))
        win_ref[0:tile_rows, :] = jnp.where(
            body_g < valid_rows, body_ref[...].astype(jnp.float32), 0.0)
        win_ref[tile_rows:tile_rows + halo_rows, :] = jnp.where(
            halo_g < valid_rows, halo_ref[...].astype(jnp.float32), 0.0)

    # Hoist the weight cast out of the tap loop; init acc with the k=0 tap.
    w = w_ref[...].astype(jnp.float32)
    acc = win_ref[0:tile_rows, :] * w[0][None, :]
    for k in range(1, context):          # static unroll over the small context
        s = k * n_batch
        acc = acc + win_ref[s:s + tile_rows, :] * w[k][None, :]

    o_ref[...] = jnp.clip(acc, 0.0, 20.0).astype(o_ref.dtype)


def lookahead_conv_hardtanh(x_cat, weight_kh, context, is_last,
                            *, target_tile_bytes=1 << 20):
    """x_cat: (T_cat, N, H) concatenated stream; weight_kh: (context, H)."""
    T_cat, N, H = x_cat.shape
    T_out = T_cat if is_last else T_cat - context + 1
    assert T_out > 0, "stream chunk shorter than the lookahead context"

    rows_in = T_cat * N
    rows_out = T_out * N

    # Halo = lookahead rows needed beyond each body tile, rounded to sublanes.
    halo_rows = max(8, _round_up((context - 1) * N, 8))

    dt_bytes = jnp.dtype(x_cat.dtype).itemsize
    h_pad = _round_up(H, 128)  # lane padding actually occupied in VMEM
    rows_target = max(1, target_tile_bytes // max(1, h_pad * dt_bytes))
    tile_rows = max(halo_rows, (rows_target // halo_rows) * halo_rows)
    tile_rows = min(tile_rows, _round_up(rows_out, halo_rows))
    num_tiles = pl.cdiv(rows_out, tile_rows)
    blocks_per_tile = tile_rows // halo_rows

    # Free (contiguous) reshape: (T, N, H) -> (T*N, H).
    x_flat = x_cat.reshape(rows_in, H)

    # Clamp the halo block index so it always starts inside the array; when it
    # is clamped, every row it would have carried has global index >= rows_in
    # and is masked to zero inside the kernel anyway.
    last_halo_block = max(0, (rows_in - 1) // halo_rows)

    body_spec = pl.BlockSpec((tile_rows, H), lambda i: (i, 0))
    halo_spec = pl.BlockSpec(
        (halo_rows, H),
        lambda i: (jnp.minimum((i + 1) * blocks_per_tile, last_halo_block), 0))
    w_spec = pl.BlockSpec((context, H), lambda i: (0, 0))       # resident
    out_spec = pl.BlockSpec((tile_rows, H), lambda i: (i, 0))

    kernel = functools.partial(
        _lookahead_kernel, tile_rows=tile_rows, halo_rows=halo_rows,
        n_batch=N, context=context, valid_rows=rows_in)

    # Explicit VMEM budget: double-buffered in/out tiles + scratch + headroom.
    vmem_est = (2 * tile_rows + 2 * halo_rows + 2 * context) * h_pad * dt_bytes
    vmem_est += 2 * tile_rows * h_pad * dt_bytes             # output double-buffer
    vmem_est += (tile_rows + halo_rows) * h_pad * 4           # window scratch
    vmem_est += 2 * tile_rows * h_pad * 4                     # acc temporaries
    vmem_limit = int(min(max(2 * vmem_est, 16 << 20), 48 << 20))

    out_flat = pl.pallas_call(
        kernel,
        out_shape=jax.ShapeDtypeStruct((rows_out, H), x_cat.dtype),
        grid=(num_tiles,),
        in_specs=[body_spec, halo_spec, w_spec],
        out_specs=out_spec,
        scratch_shapes=[pltpu.VMEM((tile_rows + halo_rows, H), jnp.float32)],
        compiler_params=pltpu.CompilerParams(
            dimension_semantics=("parallel",),
            vmem_limit_bytes=vmem_limit),
    )(x_flat, x_flat, weight_kh)

    return out_flat.reshape(T_out, N, H)


class LookaheadStream:
    """JAX/Pallas port of danspeech LookaheadStream (stateful streaming wrapper).

    The streaming buffer / first-call handling is host-side Python state,
    mirroring the PyTorch module; only the conv + hardtanh runs in the kernel.
    """

    def __init__(self, n_features, context, key):
        self.n_features = n_features
        self.context = context
        # nn.Conv1d(n_features, n_features, kernel_size=context,
        #           groups=n_features, bias=None) -> weight (n_features, 1, context)
        bound = 1.0 / (context ** 0.5)
        w = jax.random.uniform(key, (n_features, 1, context),
                               dtype=jnp.float32, minval=-bound, maxval=bound)
        # kernel-friendly layout: (context, n_features) — features on lanes.
        self.weight_kh = jnp.transpose(w[:, 0, :], (1, 0))
        self.hidden_initiated = False
        self.hidden_states_buffer = None

    def __call__(self, x, is_last, is_first):
        # x: (T, N, H) time-major chunk
        if not self.hidden_initiated or is_first:
            self.hidden_states_buffer = x
            self.hidden_initiated = True
            return jnp.array(0)
        out_in = jnp.concatenate([self.hidden_states_buffer, x], axis=0)
        self.hidden_states_buffer = x[-(self.context - 1):, :, :]
        out = lookahead_conv_hardtanh(out_in, self.weight_kh,
                                      self.context, is_last)
        if is_last:
            self.hidden_initiated = False
            self.hidden_states_buffer = None
        return out


def _reference(x_cat, weight_kh, context, is_last):
    """Pure-JAX reference of depthwise lookahead conv + hardtanh."""
    if is_last:
        x_cat = jnp.pad(x_cat, ((0, context - 1), (0, 0), (0, 0)))
    T = x_cat.shape[0]
    T_out = T - context + 1
    acc = jnp.zeros((T_out,) + x_cat.shape[1:], jnp.float32)
    for k in range(context):
        acc = acc + (x_cat[k:k + T_out].astype(jnp.float32)
                     * weight_kh[k][None, None, :])
    return jnp.clip(acc, 0.0, 20.0)


if __name__ == "__main__":
    key = jax.random.PRNGKey(0)
    k_w, k1, k2, k3, k4 = jax.random.split(key, 5)

    T, N, H, CONTEXT = 8, 2, 32, 4
    module = LookaheadStream(n_features=H, context=CONTEXT, key=k_w)

    x1 = jax.random.normal(k1, (T, N, H), dtype=jnp.float32)
    x2 = jax.random.normal(k2, (T, N, H), dtype=jnp.float32)
    x3 = jax.random.normal(k3, (T, N, H), dtype=jnp.float32)

    # Streaming protocol: first call buffers and returns scalar 0.
    out0 = module(x1, is_last=False, is_first=True)
    assert out0.shape == ()

    # Middle chunk: cat(prev, x2) -> conv -> hardtanh.
    out1 = module(x2, is_last=False, is_first=False)
    ref1 = _reference(jnp.concatenate([x1, x2], axis=0),
                      module.weight_kh, CONTEXT, is_last=False)

    # Last chunk: cat(tail(x2), x3) -> implicit right zero-pad -> conv -> hardtanh.
    out2 = module(x3, is_last=True, is_first=False)
    ref2 = _reference(jnp.concatenate([x2[-(CONTEXT - 1):], x3], axis=0),
                      module.weight_kh, CONTEXT, is_last=True)

    jax.block_until_ready((out1, out2))
    assert out1.shape == (2 * T - CONTEXT + 1, N, H), out1.shape
    assert out2.shape == (T + CONTEXT - 1, N, H), out2.shape
    assert jnp.allclose(out1, ref1, atol=1e-5, rtol=1e-5)
    assert jnp.allclose(out2, ref2, atol=1e-5, rtol=1e-5)

    # Extra check: multi-tile path with ragged edges, odd batch, clamped halo,
    # masked edge tiles (tiny target_tile_bytes forces several tiles).
    Tb, Nb, Hb, CTXb = 37, 3, 32, 5
    wkey, xkey = jax.random.split(k4)
    wb = jax.random.uniform(wkey, (CTXb, Hb), jnp.float32, minval=-0.5, maxval=0.5)
    xb = jax.random.normal(xkey, (Tb, Nb, Hb), dtype=jnp.float32)
    outb = lookahead_conv_hardtanh(xb, wb, CTXb, is_last=True,
                                   target_tile_bytes=4096)
    refb = _reference(xb, wb, CTXb, is_last=True)
    jax.block_until_ready(outb)
    assert outb.shape == refb.shape, (outb.shape, refb.shape)
    assert jnp.allclose(outb, refb, atol=1e-5, rtol=1e-5)

    print("KERNEL_OK")
</pallas_src>

<mosaic_0001>
module attributes {stable_mosaic.version = 11 : i64} {
  func.func @_lookahead_kernel(%arg0: i32, %arg1: memref<32x32xf32, #tpu.memory_space<vmem>>, %arg2: memref<8x32xf32, #tpu.memory_space<vmem>>, %arg3: memref<4x32xf32, #tpu.memory_space<vmem>>, %arg4: memref<32x32xf32, #tpu.memory_space<vmem>>, %arg5: memref<40x32xf32, #tpu.memory_space<vmem>>) attributes {dimension_semantics = [#tpu.dimension_semantics<parallel>], iteration_bounds = array<i64: 1>, scalar_prefetch = 0 : i64, scratch_operands = 1 : i64, tpu.core_type = #tpu.core_type<tc>, window_params = [{transform_indices = @transform_0, window_bounds = array<i64: 32, 32>}, {transform_indices = @transform_1, window_bounds = array<i64: 8, 32>}, {pipeline_mode = #tpu.pipeline_mode<synchronous>, transform_indices = @transform_2, window_bounds = array<i64: 4, 32>}, {transform_indices = @transform_3, window_bounds = array<i64: 32, 32>}]} {
    %c32_i32 = arith.constant 32 : i32
    %0 = arith.muli %arg0, %c32_i32 : i32
    %c32_i32_0 = arith.constant 32 : i32
    %1 = arith.addi %0, %c32_i32_0 : i32
    %c6_i32 = arith.constant 6 : i32
    %2 = arith.addi %1, %c6_i32 : i32
    %c32_i32_1 = arith.constant 32 : i32
    %3 = arith.cmpi sgt, %2, %c32_i32_1 : i32
    %true = arith.constant true
    %4 = arith.xori %3, %true : i1
    %5 = arith.extui %4 : i1 to i32
    %c0_i32 = arith.constant 0 : i32
    %6 = arith.cmpi ne, %5, %c0_i32 : i32
    scf.if %6 {
      %c0_12 = arith.constant 0 : index
      %c0_13 = arith.constant 0 : index
      %42 = vector.load %arg1[%c0_12, %c0_13] : memref<32x32xf32, #tpu.memory_space<vmem>>, vector<32x32xf32>
      %c0_14 = arith.constant 0 : index
      %c0_15 = arith.constant 0 : index
      %43 = vector.load %arg5[%c0_14, %c0_15] : memref<40x32xf32, #tpu.memory_space<vmem>>, vector<32x32xf32>
      tpu.vector_store %arg5[%c0_14, %c0_15], %42 {strides = array<i32>} : memref<40x32xf32, #tpu.memory_space<vmem>>, vector<32x32xf32>,
      %c0_16 = arith.constant 0 : index
      %c0_17 = arith.constant 0 : index
      %44 = vector.load %arg2[%c0_16, %c0_17] : memref<8x32xf32, #tpu.memory_space<vmem>>, vector<8x32xf32>
      %c32 = arith.constant 32 : index
      %c0_18 = arith.constant 0 : index
      %45 = vector.load %arg5[%c32, %c0_18] : memref<40x32xf32, #tpu.memory_space<vmem>>, vector<8x32xf32>
      tpu.vector_store %arg5[%c32, %c0_18], %44 {strides = array<i32>} : memref<40x32xf32, #tpu.memory_space<vmem>>, vector<8x32xf32>,
    } else {
    }
    %7 = arith.extui %3 : i1 to i32
    %c0_i32_2 = arith.constant 0 : i32
    %8 = arith.cmpi ne, %7, %c0_i32_2 : i32
    scf.if %8 {
      %42 = tpu.iota {dimensions = array<i32: 0>} : vector<32x1xi32>
      %43 = vector.broadcast %0 : i32 to vector<32x1xi32>
      %44 = arith.addi %43, %42 : vector<32x1xi32>
      %c32_i32_12 = arith.constant 32 : i32
      %45 = arith.addi %0, %c32_i32_12 : i32
      %46 = tpu.iota {dimensions = array<i32: 0>} : vector<8x1xi32>
      %47 = vector.broadcast %45 : i32 to vector<8x1xi32>
      %48 = arith.addi %47, %46 : vector<8x1xi32>
      %c32_i32_13 = arith.constant 32 : i32
      %49 = vector.broadcast %c32_i32_13 : i32 to vector<32x1xi32>
      %50 = arith.cmpi slt, %44, %49 : vector<32x1xi32>
      %c0_14 = arith.constant 0 : index
      %c0_15 = arith.constant 0 : index
      %51 = vector.load %arg1[%c0_14, %c0_15] : memref<32x32xf32, #tpu.memory_space<vmem>>, vector<32x32xf32>
      %cst_16 = arith.constant 0.000000e+00 : f32
      %52 = vector.shape_cast %50 : vector<32x1xi1> to vector<32x1xi1>
      %53 = vector.broadcast %52 : vector<32x1xi1> to vector<32x32xi1>
      %54 = vector.broadcast %cst_16 : f32 to vector<32x32xf32>
      %55 = arith.select %53, %51, %54 : vector<32x32xi1>, vector<32x32xf32>
      %c0_17 = arith.constant 0 : index
      %c0_18 = arith.constant 0 : index
      %56 = vector.load %arg5[%c0_17, %c0_18] : memref<40x32xf32, #tpu.memory_space<vmem>>, vector<32x32xf32>
      tpu.vector_store %arg5[%c0_17, %c0_18], %55 {strides = array<i32>} : memref<40x32xf32, #tpu.memory_space<vmem>>, vector<32x32xf32>,
      %c32_i32_19 = arith.constant 32 : i32
      %57 = vector.broadcast %c32_i32_19 : i32 to vector<8x1xi32>
      %58 = arith.cmpi slt, %48, %57 : vector<8x1xi32>
      %c0_20 = arith.constant 0 : index
      %c0_21 = arith.constant 0 : index
      %59 = vector.load %arg2[%c0_20, %c0_21] : memref<8x32xf32, #tpu.memory_space<vmem>>, vector<8x32xf32>
      %cst_22 = arith.constant 0.000000e+00 : f32
      %60 = vector.shape_cast %58 : vector<8x1xi1> to vector<8x1xi1>
      %61 = vector.broadcast %60 : vector<8x1xi1> to vector<8x32xi1>
      %62 = vector.broadcast %cst_22 : f32 to vector<8x32xf32>
      %63 = arith.select %61, %59, %62 : vector<8x32xi1>, vector<8x32xf32>
      %c32 = arith.constant 32 : index
      %c0_23 = arith.constant 0 : index
      %64 = vector.load %arg5[%c32, %c0_23] : memref<40x32xf32, #tpu.memory_space<vmem>>, vector<8x32xf32>
      tpu.vector_store %arg5[%c32, %c0_23], %63 {strides = array<i32>} : memref<40x32xf32, #tpu.memory_space<vmem>>, vector<8x32xf32>,
    } else {
    }
    %c0 = arith.constant 0 : index
    %c0_3 = arith.constant 0 : index
    %9 = vector.load %arg3[%c0, %c0_3] : memref<4x32xf32, #tpu.memory_space<vmem>>, vector<4x32xf32>
    %c0_4 = arith.constant 0 : index
    %c0_5 = arith.constant 0 : index
    %10 = vector.load %arg5[%c0_4, %c0_5] : memref<40x32xf32, #tpu.memory_space<vmem>>, vector<32x32xf32>
    %11 = vector.extract_strided_slice %9 {offsets = [0, 0], sizes = [1, 32], strides = [1, 1]} : vector<4x32xf32> to vector<1x32xf32>
    %12 = vector.shape_cast %11 : vector<1x32xf32> to vector<32xf32>
    %13 = vector.shape_cast %12 : vector<32xf32> to vector<1x32xf32>
    %14 = vector.broadcast %13 : vector<1x32xf32> to vector<32x32xf32>
    %15 = arith.mulf %10, %14 : vector<32x32xf32>
    %c2 = arith.constant 2 : index
    %c0_6 = arith.constant 0 : index
    %16 = vector.load %arg5[%c2, %c0_6] : memref<40x32xf32, #tpu.memory_space<vmem>>, vector<32x32xf32>
    %17 = vector.extract_strided_slice %9 {offsets = [1, 0], sizes = [1, 32], strides = [1, 1]} : vector<4x32xf32> to vector<1x32xf32>
    %18 = vector.shape_cast %17 : vector<1x32xf32> to vector<32xf32>
    %19 = vector.shape_cast %18 : vector<32xf32> to vector<1x32xf32>
    %20 = vector.broadcast %19 : vector<1x32xf32> to vector<32x32xf32>
    %21 = arith.mulf %16, %20 : vector<32x32xf32>
    %22 = arith.addf %15, %21 : vector<32x32xf32>
    %c4 = arith.constant 4 : index
    %c0_7 = arith.constant 0 : index
    %23 = vector.load %arg5[%c4, %c0_7] : memref<40x32xf32, #tpu.memory_space<vmem>>, vector<32x32xf32>
    %24 = vector.extract_strided_slice %9 {offsets = [2, 0], sizes = [1, 32], strides = [1, 1]} : vector<4x32xf32> to vector<1x32xf32>
    %25 = vector.shape_cast %24 : vector<1x32xf32> to vector<32xf32>
    %26 = vector.shape_cast %25 : vector<32xf32> to vector<1x32xf32>
    %27 = vector.broadcast %26 : vector<1x32xf32> to vector<32x32xf32>
    %28 = arith.mulf %23, %27 : vector<32x32xf32>
    %29 = arith.addf %22, %28 : vector<32x32xf32>
    %c6 = arith.constant 6 : index
    %c0_8 = arith.constant 0 : index
    %30 = vector.load %arg5[%c6, %c0_8] : memref<40x32xf32, #tpu.memory_space<vmem>>, vector<32x32xf32>
    %31 = vector.extract_strided_slice %9 {offsets = [3, 0], sizes = [1, 32], strides = [1, 1]} : vector<4x32xf32> to vector<1x32xf32>
    %32 = vector.shape_cast %31 : vector<1x32xf32> to vector<32xf32>
    %33 = vector.shape_cast %32 : vector<32xf32> to vector<1x32xf32>
    %34 = vector.broadcast %33 : vector<1x32xf32> to vector<32x32xf32>
    %35 = arith.mulf %30, %34 : vector<32x32xf32>
    %36 = arith.addf %29, %35 : vector<32x32xf32>
    %cst = arith.constant 0.000000e+00 : f32
    %cst_9 = arith.constant 2.000000e+01 : f32
    %37 = vector.broadcast %cst : f32 to vector<32x32xf32>
    %38 = arith.maximumf %37, %36 : vector<32x32xf32>
    %39 = vector.broadcast %cst_9 : f32 to vector<32x32xf32>
    %40 = arith.minimumf %39, %38 : vector<32x32xf32>
    %c0_10 = arith.constant 0 : index
    %c0_11 = arith.constant 0 : index
    %41 = vector.load %arg4[%c0_10, %c0_11] : memref<32x32xf32, #tpu.memory_space<vmem>>, vector<32x32xf32>
    tpu.vector_store %arg4[%c0_10, %c0_11], %40 {strides = array<i32>} : memref<32x32xf32, #tpu.memory_space<vmem>>, vector<32x32xf32>,
    return
  }
  func.func @transform_0(%arg0: i32) -> (i32, i32) {
    %c0_i32 = arith.constant 0 : i32
    %c0_i32_0 = arith.constant 0 : i32
    return %arg0, %c0_i32 : i32, i32
  }
  func.func @transform_1(%arg0: i32) -> (i32, i32) {
    %c1_i32 = arith.constant 1 : i32
    %0 = arith.addi %arg0, %c1_i32 : i32
    %c4_i32 = arith.constant 4 : i32
    %1 = arith.muli %0, %c4_i32 : i32
    %c3_i32 = arith.constant 3 : i32
    %2 = arith.minsi %1, %c3_i32 : i32
    %c0_i32 = arith.constant 0 : i32
    %c0_i32_0 = arith.constant 0 : i32
    return %2, %c0_i32 : i32, i32
  }
  func.func @transform_2(%arg0: i32) -> (i32, i32) {
    %c0_i32 = arith.constant 0 : i32
    %c0_i32_0 = arith.constant 0 : i32
    %c0_i32_1 = arith.constant 0 : i32
    return %c0_i32, %c0_i32_0 : i32, i32
  }
  func.func @transform_3(%arg0: i32) -> (i32, i32) {
    %c0_i32 = arith.constant 0 : i32
    %c0_i32_0 = arith.constant 0 : i32
    return %arg0, %c0_i32 : i32, i32
  }
}

</mosaic_0001>

<bundles_post_ra>
// kernel: tpu_custom_call.1
= control target key start
LH: loop header
LB: loop body
LE: loop exit
PB: predicated region body
PF: predicated region fallthrough
CT: control target
= control target key end

     0   :  { %8 = vsyncpa [#allocation4], 0  ;;  %s368_s0 = inlined_call_operand.hbm [shape: f32[32,32], index: 0, kind: input, shape index: {}]   ;;  %s369_s1 = inlined_call_operand.hbm [shape: f32[32,32], index: 1, kind: input, shape index: {}]   ;;  %s370_s2 = inlined_call_operand.vmem [shape: f32[4,32], index: 2, kind: input, shape index: {}]   ;;  %s371_s3 = inlined_call_operand.hbm [shape: f32[26,32], index: 3, kind: output, shape index: {}]  }
   0x1   :  { %9 = vsyncpa [#allocation7], 0 }
   0x2   :  { %10 = vsyncpa [#allocation5], 0  ;;  %s291_s12 = smov [#allocation3]   ;;  %s216_s16 = scalar_lea.hbm %s368_s0, 512 }
   0x3   :  { %s16_s13 = sshll.u32 %s291_s12, 4  ;;  %p217_p0 = scmp.ne.s32.totalorder %s368_s0, %s216_s16  ;;  %s17_s13 = int_to_ptr.vmem [resolvable:$true] %s16_s13 }
   0x4   :  { %p220_p1 = scmp.lt.u32.totalorder %s216_s16, %s368_s0 }
   0x6   :  { %p222_p2 = pnand %p220_p1, %p217_p0 }
   0x8   :  { %225 = shalt.err (!%p222_p2)
}
   0x9   :  { %s226_s21 = scalar_lea.vmem %s17_s13, 512  ;;  %p231_p4 = scmp.lt.s32.totalorder %s17_s13, %s17_s13 }
   0xa   :  { %p227_p3 = scmp.ne.s32.totalorder %s17_s13, %s226_s21  ;;  %p232_p5 = scmp.lt.s32.totalorder %s226_s21, %s226_s21 }
   0xc   :  { %p233_p6 = por %p232_p5, %p231_p4 }
   0xe   :  { %p234_p7 = pnand %p233_p6, %p227_p3 }
  0x10   :  { %237 = shalt.err (!%p234_p7)
}
  0x11   :  { %s292_s22 = smov 128   ;;  %s293_s23 = smov 8  }
  0x12   :  { %22 = dma.hbm_to_vmem [thread:$0]  %s368_s0, 512, %s17_s13, [#allocation4], %s292_s22, %s292_s22, %s293_s23  }
  0x13   :  { %s33_s28 = scalar_lea.hbm %s369_s1, 384  ;;  %s294_s29 = smov [#allocation6]  }
  0x14   :  { %s35_s30 = sshll.u32 %s294_s29, 4  ;;  %s262_s6 = scalar_lea.hbm %s369_s1, 512  ;;  %s36_s30 = int_to_ptr.vmem [resolvable:$true] %s35_s30 }
  0x15   :  { %p239_p8 = scmp.ne.s32.totalorder %s33_s28, %s262_s6  ;;  %p241_p9 = scmp.lt.u32.totalorder %s33_s28, %s369_s1 }
  0x16   :  { %p242_p10 = scmp.lt.u32.totalorder %s262_s6, %s262_s6  ;;  %p244_p12 = scmp.lt.u32.totalorder %s262_s6, %s33_s28 }
  0x18   :  { %p243_p11 = por %p242_p10, %p241_p9 }
  0x1a   :  { %p245_p13 = por %p244_p12, %p243_p11 }
  0x1c   :  { %p246_p0 = pnand %p245_p13, %p239_p8 }
  0x1e   :  { %249 = shalt.err (!%p246_p0)
}
  0x1f   :  { %s250_s0 = scalar_lea.vmem %s36_s30, 128  ;;  %p255_p2 = scmp.lt.s32.totalorder %s36_s30, %s36_s30 }
  0x20   :  { %p251_p1 = scmp.ne.s32.totalorder %s36_s30, %s250_s0  ;;  %p256_p3 = scmp.lt.s32.totalorder %s250_s0, %s250_s0 }
  0x22   :  { %p257_p4 = por %p256_p3, %p255_p2 }
  0x24   :  { %p258_p5 = pnand %p257_p4, %p251_p1 }
  0x26   :  { %261 = shalt.err (!%p258_p5)
}
  0x27   :  { %38 = dma.hbm_to_vmem [thread:$0]  %s33_s28, 128, %s36_s30, [#allocation7]  }
  0x28   :  { %285 = dma.done.wait [#allocation4], 512  }
  0x29   :  { %286 = vsyncadd [#allocation4], 4294966784 }
  0x2a   :  { %287 = dma.done.wait [#allocation7], 128  }
  0x2b   :  { %288 = vsyncadd [#allocation7], 4294967168  ;;  %vm105_vm0 = vcmask 261120   ;;  %v121_v0 = vlaneseq  ;;  %v295_v1 = vmov 0.0   ;;  %v89_v3 = vld [vmem:[#allocation3] sm:$0xff]  ;;  %v90_v4 = vld [vmem:[#allocation3 + $0x8] sm:$0xff] }
  0x2c   :  { %115 = vst.msk [vmem:[#allocation2 + $0x20] sm:$0xff] %vm105_vm0, %v295_v1  ;;  %v91_v5 = vld [vmem:[#allocation3 + $0x10] sm:$0xff]  ;;  %106 = vst.msk [vmem:[#allocation2] sm:$0xff] %vm105_vm0, %v89_v3  ;;  %v92_v6 = vld [vmem:[#allocation3 + $0x18] sm:$0xff] }
  0x2d   :  { %v122_v2 = vshrl.u32 %v121_v0, 7  ;;  %107 = vst.msk [vmem:[#allocation2 + $0x8] sm:$0xff] %vm105_vm0, %v90_v4  ;;  %108 = vst.msk [vmem:[#allocation2 + $0x10] sm:$0xff] %vm105_vm0, %v91_v5  ;;  %v116_v9 = vld [vmem:[%s370_s2] sm:$0xf]  ;;  %s296_s2 = smov [#allocation8]  }
  0x2e   :  { %109 = vst.msk [vmem:[#allocation2 + $0x18] sm:$0xff] %vm105_vm0, %v92_v6  ;;  %s195_s10 = sshll.u32 %s296_s2, 4  ;;  %s196_s10 = int_to_ptr.vmem [resolvable:$true] %s195_s10 }
  0x2f   :  { %v123_v7 = vsub.s32 0, %v122_v2  ;;  %v135_v8 = vsub.s32 1, %v122_v2  ;;  %v151_v10 = vsub.s32 2, %v122_v2  ;;  %v167_v13 = vsub.s32 3, %v122_v2  ;;  %s263_s11 = scalar_lea.vmem %s196_s10, 512  ;;  %p268_p7 = scmp.lt.s32.totalorder %s196_s10, %s196_s10 }
  0x30   :  { %p264_p6 = scmp.ne.s32.totalorder %s196_s10, %s263_s11  ;;  %p269_p8 = scmp.lt.s32.totalorder %s263_s11, %s263_s11 }
  0x31   :  { %v124_v11 = vrot.slane %v116_v9, %v123_v7  ;;  %v136_v12 = vrot.slane %v116_v9, %v135_v8  ;;  %v152_v14 = vrot.slane %v116_v9, %v151_v10  ;;  %v168_v20 = vrot.slane %v116_v9, %v167_v13 }
  0x32   :  { %p270_p9 = por %p269_p8, %p268_p7 }
  0x33   :  { %v117_v15 = vld [vmem:[#allocation2] sm:$0xff] }
  0x34   :  { %v129_v16 = vld [vmem:[#allocation2 + $0x2] sm:$0xff]  ;;  %v125_v18 = vmul.f32 %v124_v11, %v117_v15  ;;  %v130_v22 = vld [vmem:[#allocation2 + $0xa] sm:$0xff]  ;;  %p271_p10 = pnand %p270_p9, %p264_p6 }
  0x35   :  { %v145_v17 = vld [vmem:[#allocation2 + $0x4] sm:$0xff]  ;;  %v137_v19 = vmul.f32 %v136_v12, %v129_v16  ;;  %v138_v25 = vmul.f32 %v136_v12, %v130_v22  ;;  %v146_v26 = vld [vmem:[#allocation2 + $0xc] sm:$0xff]  ;;  %v147_v33 = vld [vmem:[#allocation2 + $0x14] sm:$0xff] }
  0x36   :  { %v118_v21 = vld [vmem:[#allocation2 + $0x8] sm:$0xff]  ;;  %v119_v27 = vld [vmem:[#allocation2 + $0x10] sm:$0xff]  ;;  %v153_v29 = vmul.f32 %v152_v14, %v145_v17  ;;  %v154_v35 = vmul.f32 %v152_v14, %v146_v26  ;;  %v120_v37 = vld [vmem:[#allocation2 + $0x18] sm:$0xff]  ;;  %v155_v48 = vmul.f32 %v152_v14, %v147_v33 }
  0x37   :  { %v161_v23 = vld [vmem:[#allocation2 + $0x6] sm:$0xff]  ;;  %v126_v24 = vmul.f32 %v124_v11, %v118_v21  ;;  %v141_v28 = vadd.f32 %v137_v19, %v125_v18  ;;  %v162_v30 = vld [vmem:[#allocation2 + $0xe] sm:$0xff]  ;;  %v127_v31 = vmul.f32 %v124_v11, %v119_v27  ;;  %v132_v38 = vld [vmem:[#allocation2 + $0x1a] sm:$0xff]  ;;  %v128_v43 = vmul.f32 %v124_v11, %v120_v37 }
  0x38   :  { %v131_v32 = vld [vmem:[#allocation2 + $0x12] sm:$0xff]  ;;  %v148_v39 = vld [vmem:[#allocation2 + $0x1c] sm:$0xff]  ;;  %v169_v41 = vmul.f32 %v168_v20, %v161_v23  ;;  %v140_v44 = vmul.f32 %v136_v12, %v132_v38  ;;  %v170_v46 = vmul.f32 %v168_v20, %v162_v30 }
  0x39   :  { %v142_v34 = vadd.f32 %v138_v25, %v126_v24  ;;  %v139_v36 = vmul.f32 %v136_v12, %v131_v32  ;;  %v157_v40 = vadd.f32 %v153_v29, %v141_v28  ;;  %v163_v42 = vld [vmem:[#allocation2 + $0x16] sm:$0xff]  ;;  %v164_v49 = vld [vmem:[#allocation2 + $0x1e] sm:$0xff]  ;;  %v156_v52 = vmul.f32 %v152_v14, %v148_v39 }
  0x3a   :  { %v144_v51 = vadd.f32 %v140_v44, %v128_v43  ;;  %v171_v55 = vmul.f32 %v168_v20, %v163_v42  ;;  %v172_v58 = vmul.f32 %v168_v20, %v164_v49 }
  0x3b   :  { %v158_v45 = vadd.f32 %v154_v35, %v142_v34  ;;  %v143_v47 = vadd.f32 %v139_v36, %v127_v31  ;;  %v173_v50 = vadd.f32 %v169_v41, %v157_v40 }
  0x3c   :  { %v160_v57 = vadd.f32 %v156_v52, %v144_v51 }
  0x3d   :  { %v174_v53 = vadd.f32 %v170_v46, %v158_v45  ;;  %v159_v54 = vadd.f32 %v155_v48, %v143_v47  ;;  %v177_v56 = vmax.f32 %v173_v50, 0.0 }
  0x3e   :  { %v176_v62 = vadd.f32 %v172_v58, %v160_v57 }
  0x3f   :  { %v178_v59 = vmax.f32 %v174_v53, 0.0  ;;  %v175_v60 = vadd.f32 %v171_v55, %v159_v54  ;;  %v181_v61 = vmin.f32 %v177_v56, 20.0 }
  0x40   :  { %v180_v1 = vmax.f32 %v176_v62, 0.0 }
  0x41   :  { %v182_v63 = vmin.f32 %v178_v59, 20.0  ;;  %v179_v0 = vmax.f32 %v175_v60, 0.0  ;;  %186 = vst.msk [vmem:[#allocation8] sm:$0xff] %vm105_vm0, %v181_v61 }
  0x42   :  { %v184_v3 = vmin.f32 %v180_v1, 20.0 }
  0x43   :  { %187 = vst.msk [vmem:[#allocation8 + $0x8] sm:$0xff] %vm105_vm0, %v182_v63  ;;  %v183_v2 = vmin.f32 %v179_v0, 20.0 }
  0x44   :  { %189 = vst.msk [vmem:[#allocation8 + $0x18] sm:$0xff] %vm105_vm0, %v184_v3 }
  0x45   :  { %188 = vst.msk [vmem:[#allocation8 + $0x10] sm:$0xff] %vm105_vm0, %v183_v2 }
  0x46   :  { %274 = shalt.err (!%p271_p10)
}
  0x47   :  { %s275_s14 = scalar_lea.hbm %s371_s3, 512 }
  0x48   :  { %p276_p11 = scmp.ne.s32.totalorder %s371_s3, %s275_s14  ;;  %p279_p12 = scmp.lt.u32.totalorder %s275_s14, %s371_s3 }
  0x4a   :  { %p281_p13 = pnand %p279_p12, %p276_p11 }
  0x4c   :  { %284 = shalt.err (!%p281_p13)
}
  0x4d   :  { %201 = dma.vmem_to_hbm [thread:$0]  %s196_s10, 512, %s371_s3, [#allocation5], %s292_s22, %s292_s22, %s293_s23  }
  0x4e   :  { %289 = dma.done.wait [#allocation5], 512  }
  0x4f   :  { %290 = vsyncadd [#allocation5], 4294966784 }
  0x50   :  { %205 = vsyncpa [#allocation4], 1 }
  0x51   :  { %206 = vsyncpa [#allocation7], 1 }
  0x52   :  { %207 = vsyncpa [#allocation5], 1 }

</bundles_post_ra>
